<compile_context>
chip_gen: v7x
topology: tpu7x:2x2x1
jax: 0.10.0
libtpu: 0.0.40
codegen_flags: <defaults>
</compile_context>

<pallas_src>
import functools

import jax
import jax.numpy as jnp
from jax.experimental import pallas as pl
from jax.experimental.pallas import tpu as pltpu


# bf16 operands only when the MXU is actually available; f32 otherwise so the
# interpreted (host) path can execute the dot.  Accumulation is f32 either way.
_ON_TPU = jax.devices()[0].platform == "tpu"
_MM_DTYPE = jnp.bfloat16 if _ON_TPU else jnp.float32


# -----------------------------------------------------------------------------
# Pallas kernel: fused transposed-matmul + bias + optional ReLU
#   x_ref : (tm, K)    matmul-dtype im2col patch tile
#   wt_ref: (Cout, K)  matmul-dtype transposed weights (resident in VMEM)
#   b_ref : (Cout, 1)  f32  bias column
#   o_ref : (Cout, tm) f32  lane-dense output (M on the lane axis)
# -----------------------------------------------------------------------------
def _matmul_t_bias_act_kernel(x_ref, wt_ref, b_ref, o_ref, *, apply_relu):
    acc = jax.lax.dot_general(
        wt_ref[...], x_ref[...],
        dimension_numbers=(((1,), (1,)), ((), ())),     # (Cout,K) @ (tm,K)^T
        preferred_element_type=jnp.float32)             # f32 accumulation
    acc = acc + b_ref[...]                              # (Cout,1) broadcasts over lanes
    if apply_relu:
        acc = jnp.maximum(acc, 0.0)
    o_ref[...] = acc.astype(o_ref.dtype)


def _pallas_matmul_bias_act(x, w, b, apply_relu):
    """x: (M, K) patches, w: (K, Cout), b: (Cout,) -> (Cout, M) f32 (transposed)."""
    M, K = x.shape
    _, C = w.shape

    if M >= 256:
        # Two lane-dense tiles: tm is a multiple of 128 (unmasked full-lane
        # stores, wide MXU-N tiles on v6e) and grid=2 keeps both v7x TCs busy.
        tm = 128 * pl.cdiv(pl.cdiv(M, 2), 128)
        Mp = 2 * tm
    else:
        # Tiny problem: single block, round M up to the sublane size only.
        Mp = 8 * pl.cdiv(M, 8)
        tm = Mp

    if Mp != M:
        x = jnp.pad(x, ((0, Mp - M), (0, 0)))
    grid = Mp // tm

    out_t = pl.pallas_call(
        functools.partial(_matmul_t_bias_act_kernel, apply_relu=apply_relu),
        out_shape=jax.ShapeDtypeStruct((C, Mp), jnp.float32),
        grid=(grid,),
        in_specs=[
            pl.BlockSpec((tm, K), lambda i: (i, 0)),    # patch row tile
            pl.BlockSpec((C, K), lambda i: (0, 0)),     # w^T, resident
            pl.BlockSpec((C, 1), lambda i: (0, 0)),     # bias column
        ],
        out_specs=pl.BlockSpec((C, tm), lambda i: (0, i)),
        compiler_params=pltpu.CompilerParams(
            dimension_semantics=("parallel",)),
    )(x.astype(_MM_DTYPE),                              # matmul-dtype operands,
      jnp.transpose(w).astype(_MM_DTYPE),               # f32 accumulate
      b.reshape(C, 1).astype(jnp.float32))

    if Mp != M:
        out_t = out_t[:, :M]
    return out_t


# -----------------------------------------------------------------------------
# Conv2d = JAX glue (pad + static patch extraction) + Pallas matmul kernel
# -----------------------------------------------------------------------------
def _im2col(x, kh, kw, pad):
    """x: (N, H, W, C) NHWC -> ((N*Ho*Wo, kh*kw*C), (N, Ho, Wo))."""
    if pad:
        x = jnp.pad(x, ((0, 0), (pad, pad), (pad, pad), (0, 0)))
    n, hp, wp, c = x.shape
    ho, wo = hp - kh + 1, wp - kw + 1
    cols = []
    for i in range(kh):
        for j in range(kw):
            cols.append(x[:, i:i + ho, j:j + wo, :])
    patches = jnp.concatenate(cols, axis=-1)            # (N, Ho, Wo, kh*kw*C)
    return patches.reshape(n * ho * wo, kh * kw * c), (n, ho, wo)


def conv2d_nhwc(x, w, b, pad=0, apply_relu=False, channel_major_out=False):
    """x: (N,H,W,Cin), w: (kh,kw,Cin,Cout), b: (Cout,)."""
    kh, kw, cin, cout = w.shape
    cols, (n, ho, wo) = _im2col(x, kh, kw, pad)
    out_t = _pallas_matmul_bias_act(cols, w.reshape(kh * kw * cin, cout), b,
                                    apply_relu)          # (Cout, N*Ho*Wo)
    out_t = out_t.reshape(cout, n, ho, wo)               # channel-major
    if channel_major_out:
        return out_t                                     # (Cout, N, Ho, Wo)
    return jnp.transpose(out_t, (1, 2, 3, 0))            # NHWC


# -----------------------------------------------------------------------------
# Synthetic backbone ("args.model") + contrast conv head
# -----------------------------------------------------------------------------
IN_CH = 4            # input channels of scana / scanb
ENC_CH1 = 16
ENC_CH2 = 32         # == model.encoder.out_channels[-1]
OUT_CH = 8           # args.contrast_params.out_channels
KSIZE = 3            # args.contrast_params.kernel_size


def init_params(key):
    ks = jax.random.split(key, 6)

    def he(k, shape, fan_in):
        return (jax.random.normal(k, shape, jnp.float32)
                * jnp.sqrt(2.0 / fan_in)).astype(jnp.float32)

    params = {
        # encoder stage 1: conv3x3 (IN_CH -> ENC_CH1)
        "w1": he(ks[0], (3, 3, IN_CH, ENC_CH1), 3 * 3 * IN_CH),
        "b1": jnp.zeros((ENC_CH1,), jnp.float32),
        # encoder stage 2: conv3x3 (ENC_CH1 -> ENC_CH2)
        "w2": he(ks[1], (3, 3, ENC_CH1, ENC_CH2), 3 * 3 * ENC_CH1),
        "b2": jnp.zeros((ENC_CH2,), jnp.float32),
        # contrast head: Conv2d(ENC_CH2, OUT_CH, kernel_size=KSIZE), padding=0
        "wc": he(ks[2], (KSIZE, KSIZE, ENC_CH2, OUT_CH), KSIZE * KSIZE * ENC_CH2),
        "bc": 0.01 * jax.random.normal(ks[3], (OUT_CH,), jnp.float32),
    }
    return params


def _encoder_bottleneck(params, x_nhwc):
    # TODO(synk): stride-2 slicing stands in for the backbone's downsampling;
    # the real U-Net encoder is external configuration in the original module.
    h = conv2d_nhwc(x_nhwc, params["w1"], params["b1"], pad=1, apply_relu=True)
    h = h[:, ::2, ::2, :]
    h = conv2d_nhwc(h, params["w2"], params["b2"], pad=1, apply_relu=True)
    h = h[:, ::2, ::2, :]
    return h                                              # (N, H/4, W/4, ENC_CH2)


def unet_contrast_forward(params, scana, scanb):
    """scana, scanb: (N, C, H, W) float32 -> (x_a, x_b) each (N, OUT_CH*Ho*Wo)."""
    n = scana.shape[0]
    # Fuse the two shared-weight branches on the batch axis (halves launches).
    x = jnp.concatenate([scana, scanb], axis=0)           # (2N, C, H, W)
    x = jnp.transpose(x, (0, 2, 3, 1))                    # NCHW -> NHWC
    bott = _encoder_bottleneck(params, x)
    # Contrast head: kernel already emits channel-major (Cout, 2N, Ho, Wo),
    # which matches torch's NCHW .flatten(1) after a single batch transpose.
    y = conv2d_nhwc(bott, params["wc"], params["bc"], pad=0, apply_relu=False,
                    channel_major_out=True)
    y = jnp.transpose(y, (1, 0, 2, 3)).reshape(2 * n, -1)
    return y[:n], y[n:]


if __name__ == "__main__":
    key = jax.random.PRNGKey(0)
    kp, ka, kb = jax.random.split(key, 3)

    params = init_params(kp)
    scana = jax.random.normal(ka, (2, IN_CH, 16, 16), jnp.float32)
    scanb = jax.random.normal(kb, (2, IN_CH, 16, 16), jnp.float32)

    fwd = jax.jit(unet_contrast_forward)
    x_a, x_b = fwd(params, scana, scanb)
    jax.block_until_ready((x_a, x_b))

    # bottleneck spatial 4x4, contrast conv 3x3 valid -> 2x2, OUT_CH=8 -> 32 feats
    assert x_a.shape == (2, OUT_CH * 2 * 2), x_a.shape
    assert x_b.shape == (2, OUT_CH * 2 * 2), x_b.shape
    assert x_a.dtype == jnp.float32 and x_b.dtype == jnp.float32

    print("KERNEL_OK")
</pallas_src>

<mosaic_0001>
module attributes {stable_mosaic.version = 11 : i64} {
  func.func @_matmul_t_bias_act_kernel(%arg0: i32, %arg1: memref<512x36xf32, #tpu.memory_space<vmem>>, %arg2: memref<16x36xf32, #tpu.memory_space<vmem>>, %arg3: memref<16x1xf32, #tpu.memory_space<vmem>>, %arg4: memref<16x512xf32, #tpu.memory_space<vmem>>) attributes {dimension_semantics = [#tpu.dimension_semantics<parallel>], iteration_bounds = array<i64: 2>, scalar_prefetch = 0 : i64, scratch_operands = 0 : i64, tpu.core_type = #tpu.core_type<tc>, window_params = [{transform_indices = @transform_0, window_bounds = array<i64: 512, 36>}, {pipeline_mode = #tpu.pipeline_mode<synchronous>, transform_indices = @transform_1, window_bounds = array<i64: 16, 36>}, {pipeline_mode = #tpu.pipeline_mode<synchronous>, transform_indices = @transform_2, window_bounds = array<i64: 16, 1>}, {transform_indices = @transform_3, window_bounds = array<i64: 16, 512>}]} {
    %c0 = arith.constant 0 : index
    %c0_0 = arith.constant 0 : index
    %0 = vector.load %arg2[%c0, %c0_0] : memref<16x36xf32, #tpu.memory_space<vmem>>, vector<16x36xf32>
    %c0_1 = arith.constant 0 : index
    %c0_2 = arith.constant 0 : index
    %1 = vector.load %arg1[%c0_1, %c0_2] : memref<512x36xf32, #tpu.memory_space<vmem>>, vector<512x36xf32>
    %cst = arith.constant dense<0.000000e+00> : vector<16x512xf32>
    %2 = tpu.matmul %0, %1, %cst {dimension_numbers = #tpu.dot_dimension_numbers<[1], [1], [0], [0], [0, 0, 1, 0], [], []>} : vector<16x36xf32>, vector<512x36xf32>, vector<16x512xf32> -> vector<16x512xf32>
    %c0_3 = arith.constant 0 : index
    %c0_4 = arith.constant 0 : index
    %3 = vector.load %arg3[%c0_3, %c0_4] : memref<16x1xf32, #tpu.memory_space<vmem>>, vector<16x1xf32>
    %4 = vector.broadcast %3 : vector<16x1xf32> to vector<16x512xf32>
    %5 = arith.addf %2, %4 : vector<16x512xf32>
    %cst_5 = arith.constant 0.000000e+00 : f32
    %6 = vector.broadcast %cst_5 : f32 to vector<16x512xf32>
    %7 = arith.maximumf %5, %6 : vector<16x512xf32>
    %c0_6 = arith.constant 0 : index
    %c0_7 = arith.constant 0 : index
    %8 = vector.load %arg4[%c0_6, %c0_7] : memref<16x512xf32, #tpu.memory_space<vmem>>, vector<16x512xf32>
    tpu.vector_store %arg4[%c0_6, %c0_7], %7 {strides = array<i32>} : memref<16x512xf32, #tpu.memory_space<vmem>>, vector<16x512xf32>,
    return
  }
  func.func @transform_0(%arg0: i32) -> (i32, i32) {
    %c0_i32 = arith.constant 0 : i32
    %c0_i32_0 = arith.constant 0 : i32
    return %arg0, %c0_i32 : i32, i32
  }
  func.func @transform_1(%arg0: i32) -> (i32, i32) {
    %c0_i32 = arith.constant 0 : i32
    %c0_i32_0 = arith.constant 0 : i32
    %c0_i32_1 = arith.constant 0 : i32
    return %c0_i32, %c0_i32_0 : i32, i32
  }
  func.func @transform_2(%arg0: i32) -> (i32, i32) {
    %c0_i32 = arith.constant 0 : i32
    %c0_i32_0 = arith.constant 0 : i32
    %c0_i32_1 = arith.constant 0 : i32
    return %c0_i32, %c0_i32_0 : i32, i32
  }
  func.func @transform_3(%arg0: i32) -> (i32, i32) {
    %c0_i32 = arith.constant 0 : i32
    %c0_i32_0 = arith.constant 0 : i32
    return %c0_i32, %arg0 : i32, i32
  }
}

module attributes {stable_mosaic.version = 11 : i64} {
  func.func @_matmul_t_bias_act_kernel(%arg0: i32, %arg1: memref<128x144xf32, #tpu.memory_space<vmem>>, %arg2: memref<32x144xf32, #tpu.memory_space<vmem>>, %arg3: memref<32x1xf32, #tpu.memory_space<vmem>>, %arg4: memref<32x128xf32, #tpu.memory_space<vmem>>) attributes {dimension_semantics = [#tpu.dimension_semantics<parallel>], iteration_bounds = array<i64: 2>, scalar_prefetch = 0 : i64, scratch_operands = 0 : i64, tpu.core_type = #tpu.core_type<tc>, window_params = [{transform_indices = @transform_0, window_bounds = array<i64: 128, 144>}, {pipeline_mode = #tpu.pipeline_mode<synchronous>, transform_indices = @transform_1, window_bounds = array<i64: 32, 144>}, {pipeline_mode = #tpu.pipeline_mode<synchronous>, transform_indices = @transform_2, window_bounds = array<i64: 32, 1>}, {transform_indices = @transform_3, window_bounds = array<i64: 32, 128>}]} {
    %c0 = arith.constant 0 : index
    %c0_0 = arith.constant 0 : index
    %0 = vector.load %arg2[%c0, %c0_0] : memref<32x144xf32, #tpu.memory_space<vmem>>, vector<32x144xf32>
    %c0_1 = arith.constant 0 : index
    %c0_2 = arith.constant 0 : index
    %1 = vector.load %arg1[%c0_1, %c0_2] : memref<128x144xf32, #tpu.memory_space<vmem>>, vector<128x144xf32>
    %cst = arith.constant dense<0.000000e+00> : vector<32x128xf32>
    %2 = tpu.matmul %0, %1, %cst {dimension_numbers = #tpu.dot_dimension_numbers<[1], [1], [0], [0], [0, 0, 1, 0], [], []>} : vector<32x144xf32>, vector<128x144xf32>, vector<32x128xf32> -> vector<32x128xf32>
    %c0_3 = arith.constant 0 : index
    %c0_4 = arith.constant 0 : index
    %3 = vector.load %arg3[%c0_3, %c0_4] : memref<32x1xf32, #tpu.memory_space<vmem>>, vector<32x1xf32>
    %4 = vector.broadcast %3 : vector<32x1xf32> to vector<32x128xf32>
    %5 = arith.addf %2, %4 : vector<32x128xf32>
    %cst_5 = arith.constant 0.000000e+00 : f32
    %6 = vector.broadcast %cst_5 : f32 to vector<32x128xf32>
    %7 = arith.maximumf %5, %6 : vector<32x128xf32>
    %c0_6 = arith.constant 0 : index
    %c0_7 = arith.constant 0 : index
    %8 = vector.load %arg4[%c0_6, %c0_7] : memref<32x128xf32, #tpu.memory_space<vmem>>, vector<32x128xf32>
    tpu.vector_store %arg4[%c0_6, %c0_7], %7 {strides = array<i32>} : memref<32x128xf32, #tpu.memory_space<vmem>>, vector<32x128xf32>,
    return
  }
  func.func @transform_0(%arg0: i32) -> (i32, i32) {
    %c0_i32 = arith.constant 0 : i32
    %c0_i32_0 = arith.constant 0 : i32
    return %arg0, %c0_i32 : i32, i32
  }
  func.func @transform_1(%arg0: i32) -> (i32, i32) {
    %c0_i32 = arith.constant 0 : i32
    %c0_i32_0 = arith.constant 0 : i32
    %c0_i32_1 = arith.constant 0 : i32
    return %c0_i32, %c0_i32_0 : i32, i32
  }
  func.func @transform_2(%arg0: i32) -> (i32, i32) {
    %c0_i32 = arith.constant 0 : i32
    %c0_i32_0 = arith.constant 0 : i32
    %c0_i32_1 = arith.constant 0 : i32
    return %c0_i32, %c0_i32_0 : i32, i32
  }
  func.func @transform_3(%arg0: i32) -> (i32, i32) {
    %c0_i32 = arith.constant 0 : i32
    %c0_i32_0 = arith.constant 0 : i32
    return %c0_i32, %arg0 : i32, i32
  }
}

module attributes {stable_mosaic.version = 11 : i64} {
  func.func @_matmul_t_bias_act_kernel(%arg0: i32, %arg1: memref<16x288xf32, #tpu.memory_space<vmem>>, %arg2: memref<8x288xf32, #tpu.memory_space<vmem>>, %arg3: memref<8x1xf32, #tpu.memory_space<vmem>>, %arg4: memref<8x16xf32, #tpu.memory_space<vmem>>) attributes {dimension_semantics = [#tpu.dimension_semantics<parallel>], iteration_bounds = array<i64: 1>, scalar_prefetch = 0 : i64, scratch_operands = 0 : i64, tpu.core_type = #tpu.core_type<tc>, window_params = [{transform_indices = @transform_0, window_bounds = array<i64: 16, 288>}, {pipeline_mode = #tpu.pipeline_mode<synchronous>, transform_indices = @transform_1, window_bounds = array<i64: 8, 288>}, {pipeline_mode = #tpu.pipeline_mode<synchronous>, transform_indices = @transform_2, window_bounds = array<i64: 8, 1>}, {transform_indices = @transform_3, window_bounds = array<i64: 8, 16>}]} {
    %c0 = arith.constant 0 : index
    %c0_0 = arith.constant 0 : index
    %0 = vector.load %arg2[%c0, %c0_0] : memref<8x288xf32, #tpu.memory_space<vmem>>, vector<8x288xf32>
    %c0_1 = arith.constant 0 : index
    %c0_2 = arith.constant 0 : index
    %1 = vector.load %arg1[%c0_1, %c0_2] : memref<16x288xf32, #tpu.memory_space<vmem>>, vector<16x288xf32>
    %cst = arith.constant dense<0.000000e+00> : vector<8x16xf32>
    %2 = tpu.matmul %0, %1, %cst {dimension_numbers = #tpu.dot_dimension_numbers<[1], [1], [0], [0], [0, 0, 1, 0], [], []>} : vector<8x288xf32>, vector<16x288xf32>, vector<8x16xf32> -> vector<8x16xf32>
    %c0_3 = arith.constant 0 : index
    %c0_4 = arith.constant 0 : index
    %3 = vector.load %arg3[%c0_3, %c0_4] : memref<8x1xf32, #tpu.memory_space<vmem>>, vector<8x1xf32>
    %4 = vector.broadcast %3 : vector<8x1xf32> to vector<8x16xf32>
    %5 = arith.addf %2, %4 : vector<8x16xf32>
    %c0_5 = arith.constant 0 : index
    %c0_6 = arith.constant 0 : index
    %6 = vector.load %arg4[%c0_5, %c0_6] : memref<8x16xf32, #tpu.memory_space<vmem>>, vector<8x16xf32>
    tpu.vector_store %arg4[%c0_5, %c0_6], %5 {strides = array<i32>} : memref<8x16xf32, #tpu.memory_space<vmem>>, vector<8x16xf32>,
    return
  }
  func.func @transform_0(%arg0: i32) -> (i32, i32) {
    %c0_i32 = arith.constant 0 : i32
    %c0_i32_0 = arith.constant 0 : i32
    return %arg0, %c0_i32 : i32, i32
  }
  func.func @transform_1(%arg0: i32) -> (i32, i32) {
    %c0_i32 = arith.constant 0 : i32
    %c0_i32_0 = arith.constant 0 : i32
    %c0_i32_1 = arith.constant 0 : i32
    return %c0_i32, %c0_i32_0 : i32, i32
  }
  func.func @transform_2(%arg0: i32) -> (i32, i32) {
    %c0_i32 = arith.constant 0 : i32
    %c0_i32_0 = arith.constant 0 : i32
    %c0_i32_1 = arith.constant 0 : i32
    return %c0_i32, %c0_i32_0 : i32, i32
  }
  func.func @transform_3(%arg0: i32) -> (i32, i32) {
    %c0_i32 = arith.constant 0 : i32
    %c0_i32_0 = arith.constant 0 : i32
    return %c0_i32, %arg0 : i32, i32
  }
}

</mosaic_0001>

<bundles_post_ra>
// kernel: unet_contrast_forward.3
= control target key start
LH: loop header
LB: loop body
LE: loop exit
PB: predicated region body
PF: predicated region fallthrough
CT: control target
= control target key end

     0   :  { %s1027_s12 = smov 0   ;;  %s1029_s13 = smov 0   ;;  %s1257_s0 = inlined_call_operand.vmem [shape: f32[1024,36], index: 0, kind: input, shape index: {}]   ;;  %s1258_s1 = inlined_call_operand.vmem [shape: f32[16,36], index: 1, kind: input, shape index: {}]   ;;  %s1259_s2 = inlined_call_operand.vmem [shape: f32[16,1], index: 2, kind: input, shape index: {}]   ;;  %s1260_s3 = inlined_call_operand.vmem [shape: f32[16,1024], index: 3, kind: output, shape index: {}]  }
   0x1   :  { %s1031_s14 = smov 0  }
   0x2 LB: > { %s1040_s15 = sadd.s32 4294967295, %s1004_s14   ;;  %s1042_s16 = sadd.s32 1, %s1004_s14   ;;  %s1004_s14 = sphi %s1031_s14, %s1266_s14   ;;  %s1000_s13 = sphi %s1029_s13, %s1265_s13   ;;  %s996_s12 = sphi %s1027_s12, %s1264_s12  }
   0x3   : > { %s85_s17 = ssub.s32 %s1004_s14, %s1042_s16  ;;  %s88_s18 = sadd.s32 1, %s1000_s13 }
   0x4   : > { %p86_p0 = scmp.eq.s32.totalorder %s85_s17, 0  ;;  %p98_p1 = scmp.ne.s32.totalorder %s1000_s13, %s996_s12 }
   0x5   : > { %p99_p2 = scmp.eq.s32.totalorder %s1040_s15, 1  ;;  %p710_p3 = scmp.ge.s32.totalorder %s1004_s14, 1 }
   0x6   : > { %s1050_s19 = scalar_select %p86_p0, %s1000_s13, %s88_s18  }
   0x7   : > { %p1052_p4 = por %p99_p2, %p98_p1  ;;  %p138_p5 = scmp.lt.s32.totalorder %s1004_s14, 3 }
   0x9   : > { %p139_p6 = pnand %p710_p3, %p138_p5 }
   0xa   : > { %s712_s21 = sshll.u32 (!%p139_p6), %s1040_s15, 6  ;;  %vm246_vm0 = vcmask (!%p139_p6), 293888   ;;  %v1060_v0 = vld [vmem:[%s1258_s1] sm:$0xff] (!%p139_p6)  ;;  %v1006_v2 = vmov (!%p139_p6), 0   ;;  %v235_v3 = vld [vmem:[%s1259_s2 + $0x8] sm:$0xff] (!%p139_p6)  ;;  %s158_s7 = sand.u32 (!%p139_p6), 1, %s996_s12  }
   0xb   : > { %142 = sbr.rel (%p139_p6) target bundleno = 320 (0x140), region = 32  ;;  %v234_v1 = vld [vmem:[%s1259_s2] sm:$0xff] (!%p139_p6)  ;;  %p162_p7 = scmp.lt.s32.totalorder (!%p139_p6), %s712_s21, 127  ;;  %820 = vmatprep.mubr.msk.f32.mxu0 (!%p139_p6), %vm246_vm0, %v1060_v0  ;;  %856 = vmatprep.mubr.msk.f32.mxu1 (!%p139_p6), %vm246_vm0, %v1060_v0  ;;  %vm1079_vm1 = vmpackc.low (!%p139_p6), %vm246_vm0, %vm246_vm0 }
   0xc   : > { %981 = vset.pattern.permute.xlu0 (!%p139_p6), %v1006_v2  ;;  %s711_s8 = sshll.u32 (!%p139_p6), %s158_s7, 6 }
   0xd   : > { %238 = vperm.xlu0 (!%p139_p6), %981, %v234_v1   ;;  %s1223_s9 = scalar_lea.vmem (!%p139_p6), [#allocation2], %s711_s8 }
  0x11   : > { %243 = vperm.xlu0 (!%p139_p6), %981, %v235_v3  }
  0x12   : > { %s1268_s21 = smov (!%p162_p7, %s712_s21), 127  ;;  %s787_s10 = sshll.u32 (%p1052_p4), %s1040_s15, 5 }
  0x13   : > { %s713_s28 = sshll.u32 %s1268_s21, 3  ;;  %s624_s14 = scalar_lea.vmem (%p1052_p4), %s1260_s3, %s787_s10 }
  0x14   : > { %s1075_s4 = scalar_lea.vmem %s1257_s0, %s713_s28 }
  0x15   : > { %v186_v5 = vld [vmem:[%s1075_s4 + $0x80] sm:$0xff]  ;;  %v187_v6 = vld [vmem:[%s1075_s4 + $0x88] sm:$0xff]  ;;  %v188_v16 = vld [vmem:[%s1075_s4 + $0x90] sm:$0xff] }
  0x16   : > { %v218_v7 = vld [vmem:[%s1075_s4 + $0x180] sm:$0xff]  ;;  %v860_v8 = vpack.c.bf16 %v187_v6, %v186_v5  ;;  %v219_v9 = vld [vmem:[%s1075_s4 + $0x188] sm:$0xff]  ;;  %v189_v18 = vld [vmem:[%s1075_s4 + $0x98] sm:$0xff] }
  0x17   : > { %v170_v10 = vld [vmem:[%s1075_s4] sm:$0xff]  ;;  %v171_v11 = vld [vmem:[%s1075_s4 + $0x8] sm:$0xff]  ;;  %v908_v12 = vpack.c.bf16 %v219_v9, %v218_v7  ;;  %v220_v19 = vld [vmem:[%s1075_s4 + $0x190] sm:$0xff]  ;;  %v866_v21 = vpack.c.bf16 %v189_v18, %v188_v16 }
  0x18   : > { %v863_v13 = vpack.c.bf16 %v171_v11, %v170_v10  ;;  %v202_v14 = vld [vmem:[%s1075_s4 + $0x100] sm:$0xff]  ;;  %v203_v15 = vld [vmem:[%s1075_s4 + $0x108] sm:$0xff]  ;;  %862 = vmatprep.subr.msk.bf16.mxu0 %vm1079_vm1, %v860_v8  ;;  %v221_v20 = vld [vmem:[%s1075_s4 + $0x198] sm:$0xff] }
  0x19   : > { %v911_v17 = vpack.c.bf16 %v203_v15, %v202_v14  ;;  %910 = vmatprep.subr.msk.bf16.mxu1 %vm1079_vm1, %v908_v12  ;;  %v914_v22 = vpack.c.bf16 %v221_v20, %v220_v19  ;;  %v172_v23 = vld [vmem:[%s1075_s4 + $0x10] sm:$0xff]  ;;  %v173_v24 = vld [vmem:[%s1075_s4 + $0x18] sm:$0xff]  ;;  %v190_v27 = vld [vmem:[%s1075_s4 + $0xa0] sm:$0xff] }
  0x1a   : > { %865 = vmatpush3.bf16.xpose.msk.msra.mxu0 %vm1079_vm1, %v863_v13  ;;  %v204_v25 = vld [vmem:[%s1075_s4 + $0x110] sm:$0xff]  ;;  %v205_v26 = vld [vmem:[%s1075_s4 + $0x118] sm:$0xff]  ;;  %v191_v28 = vld [vmem:[%s1075_s4 + $0xa8] sm:$0xff]  ;;  %v869_v31 = vpack.c.bf16 %v173_v24, %v172_v23 }
  0x1b   : > { %913 = vmatpush3.bf16.xpose.msk.msra.mxu1 %vm1079_vm1, %v911_v17  ;;  %868 = vmatprep.subr.msk.bf16.mxu0 %vm1079_vm1, %v866_v21  ;;  %v222_v29 = vld [vmem:[%s1075_s4 + $0x1a0] sm:$0xff]  ;;  %v223_v30 = vld [vmem:[%s1075_s4 + $0x1a8] sm:$0xff]  ;;  %v917_v32 = vpack.c.bf16 %v205_v26, %v204_v25  ;;  %v872_v33 = vpack.c.bf16 %v191_v28, %v190_v27  ;;  %v192_v39 = vld [vmem:[%s1075_s4 + $0xb0] sm:$0xff] }
  0x1c   : > { %916 = vmatprep.subr.msk.bf16.mxu1 %vm1079_vm1, %v914_v22  ;;  %v920_v34 = vpack.c.bf16 %v223_v30, %v222_v29  ;;  %v174_v35 = vld [vmem:[%s1075_s4 + $0x20] sm:$0xff]  ;;  %v175_v36 = vld [vmem:[%s1075_s4 + $0x28] sm:$0xff]  ;;  %v193_v40 = vld [vmem:[%s1075_s4 + $0xb8] sm:$0xff] }
  0x1d   : > { %v206_v37 = vld [vmem:[%s1075_s4 + $0x120] sm:$0xff]  ;;  %v207_v38 = vld [vmem:[%s1075_s4 + $0x128] sm:$0xff]  ;;  %v224_v41 = vld [vmem:[%s1075_s4 + $0x1b0] sm:$0xff]  ;;  %v875_v43 = vpack.c.bf16 %v175_v36, %v174_v35  ;;  %v878_v45 = vpack.c.bf16 %v193_v40, %v192_v39 }
  0x1e   : > { %v225_v42 = vld [vmem:[%s1075_s4 + $0x1b8] sm:$0xff]  ;;  %v923_v44 = vpack.c.bf16 %v207_v38, %v206_v37  ;;  %v176_v47 = vld [vmem:[%s1075_s4 + $0x30] sm:$0xff]  ;;  %v194_v51 = vld [vmem:[%s1075_s4 + $0xc0] sm:$0xff] }
  0x1f   : > { %v926_v46 = vpack.c.bf16 %v225_v42, %v224_v41  ;;  %v177_v48 = vld [vmem:[%s1075_s4 + $0x38] sm:$0xff]  ;;  %v208_v49 = vld [vmem:[%s1075_s4 + $0x130] sm:$0xff]  ;;  %v195_v52 = vld [vmem:[%s1075_s4 + $0xc8] sm:$0xff] }
  0x20   : > { %v209_v50 = vld [vmem:[%s1075_s4 + $0x138] sm:$0xff]  ;;  %v226_v53 = vld [vmem:[%s1075_s4 + $0x1c0] sm:$0xff]  ;;  %v227_v54 = vld [vmem:[%s1075_s4 + $0x1c8] sm:$0xff]  ;;  %v881_v55 = vpack.c.bf16 %v177_v48, %v176_v47  ;;  %v884_v57 = vpack.c.bf16 %v195_v52, %v194_v51 }
  0x21   : > { %v929_v56 = vpack.c.bf16 %v209_v50, %v208_v49  ;;  %v932_v58 = vpack.c.bf16 %v227_v54, %v226_v53  ;;  %v178_v59 = vld [vmem:[%s1075_s4 + $0x40] sm:$0xff]  ;;  %v179_v60 = vld [vmem:[%s1075_s4 + $0x48] sm:$0xff]  ;;  %v196_v63 = vld [vmem:[%s1075_s4 + $0xd0] sm:$0xff] }
  0x22   : > { %871 = vmatpush3.bf16.xpose.msk.msra.mxu0 %vm1079_vm1, %v869_v31  ;;  %v210_v61 = vld [vmem:[%s1075_s4 + $0x140] sm:$0xff]  ;;  %v211_v62 = vld [vmem:[%s1075_s4 + $0x148] sm:$0xff]  ;;  %v197_v1 = vld [vmem:[%s1075_s4 + $0xd8] sm:$0xff]  ;;  %v887_v5 = vpack.c.bf16 %v179_v60, %v178_v59 }
  0x23   : > { %919 = vmatpush3.bf16.xpose.msk.msra.mxu1 %vm1079_vm1, %v917_v32  ;;  %874 = vmatprep.subr.msk.bf16.mxu0 %vm1079_vm1, %v872_v33  ;;  %v228_v2 = vld [vmem:[%s1075_s4 + $0x1d0] sm:$0xff]  ;;  %v229_v3 = vld [vmem:[%s1075_s4 + $0x1d8] sm:$0xff]  ;;  %v935_v6 = vpack.c.bf16 %v211_v62, %v210_v61  ;;  %v890_v7 = vpack.c.bf16 %v197_v1, %v196_v63  ;;  %v198_v13 = vld [vmem:[%s1075_s4 + $0xe0] sm:$0xff] }
  0x24   : > { %922 = vmatprep.subr.msk.bf16.mxu1 %vm1079_vm1, %v920_v34  ;;  %v938_v8 = vpack.c.bf16 %v229_v3, %v228_v2  ;;  %v180_v9 = vld [vmem:[%s1075_s4 + $0x50] sm:$0xff]  ;;  %v181_v10 = vld [vmem:[%s1075_s4 + $0x58] sm:$0xff]  ;;  %v199_v14 = vld [vmem:[%s1075_s4 + $0xe8] sm:$0xff] }
  0x25   : > { %v212_v11 = vld [vmem:[%s1075_s4 + $0x150] sm:$0xff]  ;;  %v213_v12 = vld [vmem:[%s1075_s4 + $0x158] sm:$0xff]  ;;  %v230_v15 = vld [vmem:[%s1075_s4 + $0x1e0] sm:$0xff]  ;;  %v893_v17 = vpack.c.bf16 %v181_v10, %v180_v9  ;;  %v896_v19 = vpack.c.bf16 %v199_v14, %v198_v13 }
  0x26   : > { %v231_v16 = vld [vmem:[%s1075_s4 + $0x1e8] sm:$0xff]  ;;  %v941_v18 = vpack.c.bf16 %v213_v12, %v212_v11  ;;  %v182_v21 = vld [vmem:[%s1075_s4 + $0x60] sm:$0xff]  ;;  %v200_v25 = vld [vmem:[%s1075_s4 + $0xf0] sm:$0xff] }
  0x27   : > { %v944_v20 = vpack.c.bf16 %v231_v16, %v230_v15  ;;  %v183_v22 = vld [vmem:[%s1075_s4 + $0x68] sm:$0xff]  ;;  %v214_v23 = vld [vmem:[%s1075_s4 + $0x160] sm:$0xff]  ;;  %v201_v26 = vld [vmem:[%s1075_s4 + $0xf8] sm:$0xff] }
  0x28   : > { %v215_v24 = vld [vmem:[%s1075_s4 + $0x168] sm:$0xff]  ;;  %v232_v27 = vld [vmem:[%s1075_s4 + $0x1f0] sm:$0xff]  ;;  %v233_v28 = vld [vmem:[%s1075_s4 + $0x1f8] sm:$0xff]  ;;  %v899_v29 = vpack.c.bf16 %v183_v22, %v182_v21  ;;  %v902_v31 = vpack.c.bf16 %v201_v26, %v200_v25 }
  0x29   : > { %v947_v30 = vpack.c.bf16 %v215_v24, %v214_v23  ;;  %v950_v32 = vpack.c.bf16 %v233_v28, %v232_v27  ;;  %v184_v33 = vld [vmem:[%s1075_s4 + $0x70] sm:$0xff]  ;;  %v185_v34 = vld [vmem:[%s1075_s4 + $0x78] sm:$0xff]  ;;  %v169_v39 = vld [vmem:[%s1258_s1 + $0x8] sm:$0xff] }
  0x2a   : > { %877 = vmatpush3.bf16.xpose.msk.msra.mxu0 %vm1079_vm1, %v875_v43  ;;  %v216_v35 = vld [vmem:[%s1075_s4 + $0x170] sm:$0xff]  ;;  %v217_v36 = vld [vmem:[%s1075_s4 + $0x178] sm:$0xff]  ;;  %v905_v37 = vpack.c.bf16 %v185_v34, %v184_v33 }
  0x2b   : > { %925 = vmatpush3.bf16.xpose.msk.msra.mxu1 %vm1079_vm1, %v923_v44  ;;  %880 = vmatprep.subr.msk.bf16.mxu0 %vm1079_vm1, %v878_v45  ;;  %v953_v38 = vpack.c.bf16 %v217_v36, %v216_v35 }
  0x2c   : > { %928 = vmatprep.subr.msk.bf16.mxu1 %vm1079_vm1, %v926_v46 }
  0x32   : > { %883 = vmatpush3.bf16.xpose.msk.msra.mxu0 %vm1079_vm1, %v881_v55 }
  0x33   : > { %931 = vmatpush3.bf16.xpose.msk.msra.mxu1 %vm1079_vm1, %v929_v56  ;;  %886 = vmatprep.subr.msk.bf16.mxu0 %vm1079_vm1, %v884_v57 }
  0x34   : > { %934 = vmatprep.subr.msk.bf16.mxu1 %vm1079_vm1, %v932_v58 }
  0x3a   : > { %889 = vmatpush3.bf16.xpose.msk.msra.mxu0 %vm1079_vm1, %v887_v5 }
  0x3b   : > { %937 = vmatpush3.bf16.xpose.msk.msra.mxu1 %vm1079_vm1, %v935_v6  ;;  %892 = vmatprep.subr.msk.bf16.mxu0 %vm1079_vm1, %v890_v7 }
  0x3c   : > { %940 = vmatprep.subr.msk.bf16.mxu1 %vm1079_vm1, %v938_v8 }
  0x42   : > { %895 = vmatpush3.bf16.xpose.msk.msra.mxu0 %vm1079_vm1, %v893_v17 }
  0x43   : > { %943 = vmatpush3.bf16.xpose.msk.msra.mxu1 %vm1079_vm1, %v941_v18  ;;  %898 = vmatprep.subr.msk.bf16.mxu0 %vm1079_vm1, %v896_v19 }
  0x44   : > { %946 = vmatprep.subr.msk.bf16.mxu1 %vm1079_vm1, %v944_v20 }
  0x4a   : > { %901 = vmatpush3.bf16.xpose.msk.msra.mxu0 %vm1079_vm1, %v899_v29 }
  0x4b   : > { %949 = vmatpush3.bf16.xpose.msk.msra.mxu1 %vm1079_vm1, %v947_v30  ;;  %904 = vmatprep.subr.msk.bf16.mxu0 %vm1079_vm1, %v902_v31 }
  0x4c   : > { %952 = vmatprep.subr.msk.bf16.mxu1 %vm1079_vm1, %v950_v32 }
  0x52   : > { %907 = vmatpush3.bf16.xpose.msk.msra.mxu0 %vm1079_vm1, %v905_v37 }
  0x53   : > { %955 = vmatpush3.bf16.xpose.msk.msra.mxu1 %vm1079_vm1, %v953_v38 }
  0x59   : > { %821 = vmatmul.mubr.msk.f32.vlgmr.msra.gmra.mrb[0].mxu0 %vm246_vm0, %v1060_v0 }
  0x5a   : > { %857 = vmatmul.mubr.msk.f32.vlgmr.msra.gmra.mrb[0].mxu1 %vm246_vm0, %v1060_v0  ;;  %822 = vmatprep.mubr.msk.f32.mxu0 %vm246_vm0, %v169_v39 }
  0x5b   : > { %858 = vmatprep.mubr.msk.f32.mxu1 %vm246_vm0, %v169_v39 }
  0x5d   : > { %823 = vmatmul.mubr.msk.f32.gmra.mrb[2].mxu0 %vm246_vm0, %v169_v39 }
  0x5e   : > { %859 = vmatmul.mubr.msk.f32.gmra.mrb[2].mxu1 %vm246_vm0, %v169_v39 }
  0x8c   : > { %v239_v4 = vpop.permute.xlu0 %238 }
  0x90   : > { %v244_v49 = vpop.permute.xlu0 %243 }
 0x12c   : > { %v511_v40 = vpop.f32.mrb[0].mxu0 }
 0x12d   : > { %v512_v41 = vadd.f32 %v511_v40, %v239_v4  ;;  %v588_v42 = vpop.f32.mrb[0].mxu1  ;;  %v513_v43 = vpop.f32.mrb[1].mxu0 }
 0x12e   : > { %v589_v44 = vadd.f32 %v588_v42, %v239_v4  ;;  %v514_v45 = vadd.f32 %v513_v43, %v239_v4  ;;  %v590_v46 = vpop.f32.mrb[1].mxu1 }
 0x12f   : > { %v599_v47 = vmax.f32 %v512_v41, 0.0  ;;  %v591_v0 = vadd.f32 %v590_v46, %v239_v4 }
 0x130   : > { %v601_v48 = vmax.f32 %v589_v44, 0.0  ;;  %v600_v50 = vmax.f32 %v514_v45, 0.0  ;;  %v517_v51 = vpop.f32.mrb[2].mxu0 }
 0x131   : > { %607 = vst [vmem:[%s1223_s9] sm:$0xff] %v599_v47  ;;  %v602_v52 = vmax.f32 %v591_v0, 0.0  ;;  %v518_v53 = vadd.f32 %v517_v51, %v244_v49  ;;  %v594_v54 = vpop.f32.mrb[2].mxu1  ;;  %v519_v55 = vpop.f32.mrb[3].mxu0  ;;  %621 = sbr.rel (!%p1052_p4) target bundleno = 320 (0x140), region = 36 }
 0x132   : > { %609 = vst [vmem:[%s1223_s9 + $0x10] sm:$0xff] %v601_v48  ;;  %608 = vst [vmem:[%s1223_s9 + $0x8] sm:$0xff] %v600_v50  ;;  %v595_v56 = vadd.f32 %v594_v54, %v244_v49  ;;  %v520_v57 = vadd.f32 %v519_v55, %v244_v49  ;;  %v596_v58 = vpop.f32.mrb[3].mxu1 }
 0x133   : > { %610 = vst [vmem:[%s1223_s9 + $0x18] sm:$0xff] %v602_v52  ;;  %v603_v59 = vmax.f32 %v518_v53, 0.0  ;;  %v597_v60 = vadd.f32 %v596_v58, %v244_v49 }
 0x134   : > { %v605_v61 = vmax.f32 %v595_v56, 0.0  ;;  %v604_v62 = vmax.f32 %v520_v57, 0.0 }
 0x135   : > { %611 = vst [vmem:[%s1223_s9 + $0x20] sm:$0xff] %v603_v59  ;;  %v606_v63 = vmax.f32 %v597_v60, 0.0 }
 0x136   : > { %613 = vst [vmem:[%s1223_s9 + $0x30] sm:$0xff] %v605_v61  ;;  %612 = vst [vmem:[%s1223_s9 + $0x28] sm:$0xff] %v604_v62 }
 0x137   : > { %614 = vst [vmem:[%s1223_s9 + $0x38] sm:$0xff] %v606_v63 }
 0x138   : > { %v637_v1 = vld [vmem:[%s1223_s9] sm:$0xff] }
 0x139   : > { %v639_v2 = vld [vmem:[%s1223_s9 + $0x8] sm:$0xff]  ;;  %v641_v3 = vld [vmem:[%s1223_s9 + $0x10] sm:$0xff]  ;;  %638 = vst [vmem:[%s624_s14] sm:$0xff] %v637_v1 }
 0x13a   : > { %v643_v5 = vld [vmem:[%s1223_s9 + $0x18] sm:$0xff]  ;;  %640 = vst [vmem:[%s624_s14 + $0x8] sm:$0xff] %v639_v2  ;;  %642 = vst [vmem:[%s624_s14 + $0x10] sm:$0xff] %v641_v3 }
 0x13b   : > { %644 = vst [vmem:[%s624_s14 + $0x18] sm:$0xff] %v643_v5 }
 0x13c   : > { %v645_v6 = vld [vmem:[%s1223_s9 + $0x20] sm:$0xff] }
 0x13d   : > { %v647_v7 = vld [vmem:[%s1223_s9 + $0x28] sm:$0xff]  ;;  %646 = vst [vmem:[%s624_s14 + $0x40] sm:$0xff] %v645_v6  ;;  %v649_v8 = vld [vmem:[%s1223_s9 + $0x30] sm:$0xff] }
 0x13e   : > { %648 = vst [vmem:[%s624_s14 + $0x48] sm:$0xff] %v647_v7  ;;  %v651_v9 = vld [vmem:[%s1223_s9 + $0x38] sm:$0xff]  ;;  %650 = vst [vmem:[%s624_s14 + $0x50] sm:$0xff] %v649_v8 }
 0x13f   : > { %652 = vst [vmem:[%s624_s14 + $0x58] sm:$0xff] %v651_v9 }
 0x140 PF: > { %p10_p8 = scmp.ge.s32.totalorder %s1042_s16, 4   ;;  %s1264_s12 = smov %s1000_s13 }
 0x141   : > { %s1265_s13 = smov %s1050_s19  ;;  %s1266_s14 = smov %s1042_s16 }
 0x142   :  { %12 = sbr.rel (!%p10_p8) target bundleno = 2 (0x2), region = 85 }

// kernel: unet_contrast_forward.4
= control target key start
LH: loop header
LB: loop body
LE: loop exit
PB: predicated region body
PF: predicated region fallthrough
CT: control target
= control target key end

     0   :  { %s653_s12 = smov 0   ;;  %s655_s13 = smov 0   ;;  %s815_s0 = inlined_call_operand.vmem [shape: f32[256,144], index: 0, kind: input, shape index: {}]   ;;  %s816_s1 = inlined_call_operand.vmem [shape: f32[32,144], index: 1, kind: input, shape index: {}]   ;;  %s817_s2 = inlined_call_operand.vmem [shape: f32[32,1], index: 2, kind: input, shape index: {}]   ;;  %s818_s3 = inlined_call_operand.vmem [shape: f32[32,256], index: 3, kind: output, shape index: {}]  }
   0x1   :  { %s657_s14 = smov 0  }
   0x2 LB: > { %s666_s15 = sadd.s32 4294967295, %s630_s14   ;;  %s668_s16 = sadd.s32 1, %s630_s14   ;;  %s630_s14 = sphi %s657_s14, %s824_s14   ;;  %s626_s13 = sphi %s655_s13, %s823_s13   ;;  %s622_s12 = sphi %s653_s12, %s822_s12  }
   0x3   : > { %s85_s17 = ssub.s32 %s630_s14, %s668_s16  ;;  %s88_s18 = sadd.s32 1, %s626_s13 }
   0x4   : > { %p86_p0 = scmp.eq.s32.totalorder %s85_s17, 0  ;;  %p98_p1 = scmp.ne.s32.totalorder %s626_s13, %s622_s12 }
   0x5   : > { %p99_p2 = scmp.eq.s32.totalorder %s666_s15, 1  ;;  %p495_p3 = scmp.ge.s32.totalorder %s630_s14, 1 }
   0x6   : > { %s676_s19 = scalar_select %p86_p0, %s626_s13, %s88_s18  }
   0x7   : > { %p678_p4 = por %p99_p2, %p98_p1  ;;  %p139_p5 = scmp.lt.s32.totalorder %s630_s14, 3 }
   0x9   : > { %p140_p6 = pnand %p495_p3, %p139_p5 }
   0xa   : > { %s497_s21 = sshll.u32 (!%p140_p6), %s666_s15, 4  ;;  %vm234_vm0 = vcmask (!%p140_p6), 130048   ;;  %v171_v0 = vld [vmem:[%s816_s1 + $0x8] sm:$0xff] (!%p140_p6)  ;;  %v632_v2 = vmov (!%p140_p6), 0   ;;  %v212_v3 = vld [vmem:[%s817_s2 + $0x10] sm:$0xff] (!%p140_p6)  ;;  %v210_v4 = vld [vmem:[%s817_s2] sm:$0xff] (!%p140_p6) }
   0xb   : > { %143 = sbr.rel (%p140_p6) target bundleno = 317 (0x13d), region = 32  ;;  %v175_v1 = vld [vmem:[%s816_s1 + $0x28] sm:$0xff] (!%p140_p6)  ;;  %p164_p7 = scmp.lt.s32.totalorder (!%p140_p6), %s497_s21, 31  ;;  %516 = vmatprep.mubr.msk.f32.mxu0 (!%p140_p6), %vm234_vm0, %v171_v0  ;;  %607 = vset.pattern.permute.xlu1 (!%p140_p6), %v632_v2  ;;  %v213_v5 = vld [vmem:[%s817_s2 + $0x18] sm:$0xff] (!%p140_p6)  ;;  %vm710_vm1 = vmpackc.low (!%p140_p6), %vm234_vm0, %vm234_vm0 }
   0xc   : > { %518 = vmatprep.mubr.msk.f32.mxu1 (!%p140_p6), %vm234_vm0, %v175_v1  ;;  %606 = vset.pattern.permute.xlu0 (!%p140_p6), %v632_v2  ;;  %v211_v6 = vld [vmem:[%s817_s2 + $0x8] sm:$0xff] (!%p140_p6)  ;;  %v170_v56 = vld [vmem:[%s816_s1] sm:$0xff] (!%p140_p6)  ;;  %v173_v58 = vld [vmem:[%s816_s1 + $0x18] sm:$0xff] (!%p140_p6)  ;;  %s160_s29 = sand.u32 (!%p140_p6), 1, %s622_s12  }
   0xd   : > { %226 = vperm.xlu1 (!%p140_p6), %607, %v212_v3   ;;  %216 = vperm.xlu0 (!%p140_p6), %606, %v210_v4   ;;  %v174_v57 = vld [vmem:[%s816_s1 + $0x20] sm:$0xff] (!%p140_p6)  ;;  %v177_v59 = vld [vmem:[%s816_s1 + $0x38] sm:$0xff] (!%p140_p6)  ;;  %v172_v60 = vld [vmem:[%s816_s1 + $0x10] sm:$0xff] (!%p140_p6) }
   0xe   : > { %v176_v61 = vld [vmem:[%s816_s1 + $0x30] sm:$0xff] (!%p140_p6) }
  0x11   : > { %231 = vperm.xlu1 (!%p140_p6), %607, %v213_v5   ;;  %221 = vperm.xlu0 (!%p140_p6), %606, %v211_v6  }
  0x12   : > { %s826_s21 = smov (!%p164_p7, %s497_s21), 31  ;;  %s521_s12 = sshll.u32 (%p678_p4), %s666_s15, 3 }
  0x13   : > { %s524_s30 = sshll.u32 %s826_s21, 4  ;;  %s396_s7 = scalar_lea.vmem (%p678_p4), %s818_s3, %s521_s12 }
  0x14   : > { %s706_s10 = scalar_lea.vmem %s815_s0, %s524_s30  ;;  %s496_s30 = sshll.u32 %s160_s29, 5 }
  0x15   : > { %v179_v8 = vld [vmem:[%s706_s10 + $0x8] sm:$0xff]  ;;  %v181_v9 = vld [vmem:[%s706_s10 + $0x18] sm:$0xff]  ;;  %v178_v10 = vld [vmem:[%s706_s10] sm:$0xff]  ;;  %s162_s4 = scalar_lea.vmem [#allocation2], %s496_s30 }
  0x16   : > { %v525_v11 = vpack.c.bf16 %v181_v9, %v179_v8  ;;  %v180_v12 = vld [vmem:[%s706_s10 + $0x10] sm:$0xff]  ;;  %v183_v13 = vld [vmem:[%s706_s10 + $0x28] sm:$0xff]  ;;  %v185_v14 = vld [vmem:[%s706_s10 + $0x38] sm:$0xff] }
  0x17   : > { %v528_v15 = vpack.c.bf16 %v180_v12, %v178_v10  ;;  %v530_v16 = vpack.c.bf16 %v185_v14, %v183_v13  ;;  %v182_v17 = vld [vmem:[%s706_s10 + $0x20] sm:$0xff]  ;;  %v184_v18 = vld [vmem:[%s706_s10 + $0x30] sm:$0xff]  ;;  %v187_v19 = vld [vmem:[%s706_s10 + $0x48] sm:$0xff] }
  0x18   : > { %527 = vmatprep.subr.msk.bf16.mxu0 %vm710_vm1, %v525_v11  ;;  %565 = vmatprep.subr.msk.bf16.mxu1 %vm710_vm1, %v525_v11  ;;  %v189_v20 = vld [vmem:[%s706_s10 + $0x58] sm:$0xff]  ;;  %v533_v21 = vpack.c.bf16 %v184_v18, %v182_v17  ;;  %v186_v23 = vld [vmem:[%s706_s10 + $0x40] sm:$0xff]  ;;  %v188_v24 = vld [vmem:[%s706_s10 + $0x50] sm:$0xff] }
  0x19   : > { %529 = vmatpush1.bf16.xpose.msra.mxu0 %v528_v15  ;;  %573 = vmatpush1.bf16.xpose.msra.mxu1 %v528_v15  ;;  %v535_v22 = vpack.c.bf16 %v189_v20, %v187_v19  ;;  %v191_v25 = vld [vmem:[%s706_s10 + $0x68] sm:$0xff]  ;;  %v193_v26 = vld [vmem:[%s706_s10 + $0x78] sm:$0xff]  ;;  %v538_v27 = vpack.c.bf16 %v188_v24, %v186_v23  ;;  %v190_v29 = vld [vmem:[%s706_s10 + $0x60] sm:$0xff] }
  0x1a   : > { %532 = vmatprep.subr.msk.bf16.mxu0 %vm710_vm1, %v530_v16  ;;  %566 = vmatprep.subr.msk.bf16.mxu1 %vm710_vm1, %v530_v16  ;;  %v540_v28 = vpack.c.bf16 %v193_v26, %v191_v25  ;;  %v192_v30 = vld [vmem:[%s706_s10 + $0x70] sm:$0xff]  ;;  %v195_v31 = vld [vmem:[%s706_s10 + $0x88] sm:$0xff]  ;;  %v197_v32 = vld [vmem:[%s706_s10 + $0x98] sm:$0xff] }
  0x1b   : > { %v543_v33 = vpack.c.bf16 %v192_v30, %v190_v29  ;;  %v545_v34 = vpack.c.bf16 %v197_v32, %v195_v31  ;;  %v194_v35 = vld [vmem:[%s706_s10 + $0x80] sm:$0xff]  ;;  %v196_v36 = vld [vmem:[%s706_s10 + $0x90] sm:$0xff]  ;;  %v199_v37 = vld [vmem:[%s706_s10 + $0xa8] sm:$0xff] }
  0x1c   : > { %v201_v38 = vld [vmem:[%s706_s10 + $0xb8] sm:$0xff]  ;;  %v548_v39 = vpack.c.bf16 %v196_v36, %v194_v35  ;;  %v198_v41 = vld [vmem:[%s706_s10 + $0xa0] sm:$0xff]  ;;  %v200_v42 = vld [vmem:[%s706_s10 + $0xb0] sm:$0xff] }
  0x1d   : > { %v550_v40 = vpack.c.bf16 %v201_v38, %v199_v37  ;;  %v203_v43 = vld [vmem:[%s706_s10 + $0xc8] sm:$0xff]  ;;  %v205_v44 = vld [vmem:[%s706_s10 + $0xd8] sm:$0xff]  ;;  %v553_v45 = vpack.c.bf16 %v200_v42, %v198_v41  ;;  %v202_v47 = vld [vmem:[%s706_s10 + $0xc0] sm:$0xff] }
  0x1e   : > { %v555_v46 = vpack.c.bf16 %v205_v44, %v203_v43  ;;  %v204_v48 = vld [vmem:[%s706_s10 + $0xd0] sm:$0xff]  ;;  %v207_v49 = vld [vmem:[%s706_s10 + $0xe8] sm:$0xff]  ;;  %v209_v50 = vld [vmem:[%s706_s10 + $0xf8] sm:$0xff] }
  0x1f   : > { %v558_v51 = vpack.c.bf16 %v204_v48, %v202_v47  ;;  %v560_v52 = vpack.c.bf16 %v209_v50, %v207_v49  ;;  %v206_v53 = vld [vmem:[%s706_s10 + $0xe0] sm:$0xff]  ;;  %v208_v54 = vld [vmem:[%s706_s10 + $0xf0] sm:$0xff] }
  0x20   : > { %v563_v55 = vpack.c.bf16 %v208_v54, %v206_v53 }
  0x21   : > { %534 = vmatpush1.bf16.xpose.msra.mxu0 %v533_v21  ;;  %574 = vmatpush1.bf16.xpose.msra.mxu1 %v533_v21 }
  0x22   : > { %537 = vmatprep.subr.msk.bf16.mxu0 %vm710_vm1, %v535_v22  ;;  %567 = vmatprep.subr.msk.bf16.mxu1 %vm710_vm1, %v535_v22 }
  0x29   : > { %539 = vmatpush1.bf16.xpose.msra.mxu0 %v538_v27  ;;  %575 = vmatpush1.bf16.xpose.msra.mxu1 %v538_v27 }
  0x2a   : > { %542 = vmatprep.subr.msk.bf16.mxu0 %vm710_vm1, %v540_v28  ;;  %568 = vmatprep.subr.msk.bf16.mxu1 %vm710_vm1, %v540_v28 }
  0x31   : > { %544 = vmatpush1.bf16.xpose.msra.mxu0 %v543_v33  ;;  %576 = vmatpush1.bf16.xpose.msra.mxu1 %v543_v33 }
  0x32   : > { %547 = vmatprep.subr.msk.bf16.mxu0 %vm710_vm1, %v545_v34  ;;  %569 = vmatprep.subr.msk.bf16.mxu1 %vm710_vm1, %v545_v34 }
  0x39   : > { %549 = vmatpush1.bf16.xpose.msra.mxu0 %v548_v39  ;;  %577 = vmatpush1.bf16.xpose.msra.mxu1 %v548_v39 }
  0x3a   : > { %552 = vmatprep.subr.msk.bf16.mxu0 %vm710_vm1, %v550_v40  ;;  %570 = vmatprep.subr.msk.bf16.mxu1 %vm710_vm1, %v550_v40 }
  0x41   : > { %554 = vmatpush1.bf16.xpose.msra.mxu0 %v553_v45  ;;  %578 = vmatpush1.bf16.xpose.msra.mxu1 %v553_v45 }
  0x42   : > { %557 = vmatprep.subr.msk.bf16.mxu0 %vm710_vm1, %v555_v46  ;;  %571 = vmatprep.subr.msk.bf16.mxu1 %vm710_vm1, %v555_v46 }
  0x49   : > { %559 = vmatpush1.bf16.xpose.msra.mxu0 %v558_v51  ;;  %579 = vmatpush1.bf16.xpose.msra.mxu1 %v558_v51 }
  0x4a   : > { %562 = vmatprep.subr.msk.bf16.mxu0 %vm710_vm1, %v560_v52  ;;  %572 = vmatprep.subr.msk.bf16.mxu1 %vm710_vm1, %v560_v52 }
  0x51   : > { %564 = vmatpush1.bf16.xpose.msra.mxu0 %v563_v55  ;;  %580 = vmatpush1.bf16.xpose.msra.mxu1 %v563_v55 }
  0x58   : > { %360 = vmatmul.mubr.f32.vlgmr.msra.gmra.mrb[0].mxu0 %v170_v56  ;;  %370 = vmatmul.mubr.f32.vlgmr.msra.gmra.mrb[0].mxu1 %v174_v57 }
  0x59   : > { %517 = vmatprep.mubr.msk.f32.mxu0 %vm234_vm0, %v173_v58  ;;  %519 = vmatprep.mubr.msk.f32.mxu1 %vm234_vm0, %v177_v59 }
  0x5c   : > { %365 = vmatmul.mubr.f32.gmra.mrb[2].mxu0 %v172_v60  ;;  %375 = vmatmul.mubr.f32.gmra.mrb[2].mxu1 %v176_v61 }
  0x8c   : > { %v227_v62 = vpop.permute.xlu1 %226  ;;  %v217_v63 = vpop.permute.xlu0 %216 }
  0x90   : > { %v232_v6 = vpop.permute.xlu1 %231  ;;  %v222_v7 = vpop.permute.xlu0 %221 }
 0x12b   : > { %v361_v0 = vpop.f32.mrb[0].mxu0  ;;  %v371_v1 = vpop.f32.mrb[0].mxu1 }
 0x12c   : > { %v362_v2 = vadd.f32 %v361_v0, %v217_v63  ;;  %v372_v3 = vadd.f32 %v371_v1, %v227_v62  ;;  %v363_v4 = vpop.f32.mrb[1].mxu0  ;;  %v373_v5 = vpop.f32.mrb[1].mxu1 }
 0x12e   : > { %v380_v8 = vmax.f32 %v362_v2, 0.0  ;;  %v382_v9 = vmax.f32 %v372_v3, 0.0  ;;  %394 = sbr.rel (!%p678_p4) target bundleno = 317 (0x13d), region = 36 }
 0x12f   : > { %v366_v10 = vpop.f32.mrb[2].mxu0  ;;  %v376_v11 = vpop.f32.mrb[2].mxu1 }
 0x130   : > { %384 = vst [vmem:[%s162_s4] sm:$0xff] %v380_v8  ;;  %386 = vst [vmem:[%s162_s4 + $0x10] sm:$0xff] %v382_v9  ;;  %v367_v12 = vadd.f32 %v366_v10, %v222_v7  ;;  %v377_v13 = vadd.f32 %v376_v11, %v232_v6  ;;  %v368_v14 = vpop.f32.mrb[3].mxu0  ;;  %v378_v15 = vpop.f32.mrb[3].mxu1 }
 0x132   : > { %v381_v16 = vmax.f32 %v367_v12, 0.0  ;;  %v383_v17 = vmax.f32 %v377_v13, 0.0 }
 0x134   : > { %385 = vst [vmem:[%s162_s4 + $0x8] sm:$0xff] %v381_v16  ;;  %387 = vst [vmem:[%s162_s4 + $0x18] sm:$0xff] %v383_v17 }
 0x137   : > { %v430_v18 = vld [vmem:[%s162_s4] sm:$0xff]  ;;  %v434_v20 = vld [vmem:[%s162_s4 + $0x10] sm:$0xff] }
 0x138   : > { %431 = vst [vmem:[%s396_s7] sm:$0xff] %v430_v18  ;;  %435 = vst [vmem:[%s396_s7 + $0x20] sm:$0xff] %v434_v20 }
 0x13b   : > { %v432_v19 = vld [vmem:[%s162_s4 + $0x8] sm:$0xff]  ;;  %v436_v21 = vld [vmem:[%s162_s4 + $0x18] sm:$0xff] }
 0x13c   : > { %433 = vst [vmem:[%s396_s7 + $0x10] sm:$0xff] %v432_v19  ;;  %437 = vst [vmem:[%s396_s7 + $0x30] sm:$0xff] %v436_v21 }
 0x13d PF: > { %p10_p8 = scmp.ge.s32.totalorder %s668_s16, 4   ;;  %s822_s12 = smov %s626_s13 }
 0x13e   : > { %s823_s13 = smov %s676_s19  ;;  %s824_s14 = smov %s668_s16 }
 0x13f   :  { %12 = sbr.rel (!%p10_p8) target bundleno = 2 (0x2), region = 100 }

// kernel: unet_contrast_forward.5
= control target key start
LH: loop header
LB: loop body
LE: loop exit
PB: predicated region body
PF: predicated region fallthrough
CT: control target
= control target key end

     0   :  { %vm29_vm0 = vcmask 261120   ;;  %v213_v3 = vmov 0.0|0.0   ;;  %vm214_vm1 = vmmov 0   ;;  %v215_v4 = vmov 0.0   ;;  %s273_s0 = inlined_call_operand.vmem [shape: f32[16,288], index: 0, kind: input, shape index: {}]   ;;  %s274_s1 = inlined_call_operand.vmem [shape: f32[8,288], index: 1, kind: input, shape index: {}]   ;;  %s275_s2 = inlined_call_operand.vmem [shape: f32[8,1], index: 2, kind: input, shape index: {}]   ;;  %s276_s3 = inlined_call_operand.vmem [shape: f32[8,16], index: 3, kind: output, shape index: {}]  }
   0x1   :  { %v18_v0 = vld [vmem:[%s273_s0 + $0x8] sm:$0xff]  ;;  %v21_v1 = vld [vmem:[%s273_s0 + $0x20] sm:$0xff]  ;;  %202 = vmatprep.subr.bf16.mxu0 %v213_v3  ;;  %195 = vmatprep.mubr.msk.f32.mxu0 %vm214_vm1, %v215_v4  ;;  %v20_v6 = vld [vmem:[%s273_s0 + $0x18] sm:$0xff]  ;;  %v216_v9 = vmov 0   ;;  %vm179_vm3 = vcmask 130048  }
   0x2   :  { %v17_v2 = vld [vmem:[%s273_s0] sm:$0xff]  ;;  %v198_v5 = vpack.c.bf16 %v21_v1, %v18_v0  ;;  %v19_v7 = vld [vmem:[%s273_s0 + $0x10] sm:$0xff]  ;;  %v22_v8 = vld [vmem:[%s273_s0 + $0x28] sm:$0xff]  ;;  %212 = vset.pattern.permute.xlu0 %v216_v9 }
   0x3   :  { %v200_v10 = vpack.c.bf16 %v20_v6, %v17_v2  ;;  %v203_v11 = vpack.c.bf16 %v22_v8, %v19_v7  ;;  %vm204_vm2 = vmpackc.low %vm29_vm0, %vm29_vm0  ;;  %v15_v12 = vld [vmem:[%s274_s1 + $0x8] sm:$0xff]  ;;  %v23_v13 = vld [vmem:[%s275_s2] sm:$0xff] }
   0x4   :  { %199 = vmatprep.subr.bf16.mxu1 %v198_v5  ;;  %103 = vmatprep.mubr.f32.mxu1 %v15_v12  ;;  %v14_v14 = vld [vmem:[%s274_s1] sm:$0xff]  ;;  %v16_v15 = vld [vmem:[%s274_s1 + $0x10] sm:$0xff] }
   0x5   :  { %201 = vmatpush1.bf16.xpose.msra.mxu1 %v200_v10  ;;  %205 = vmatpush3.bf16.xpose.msk.msra.mxu0 %vm204_vm2, %v203_v11 }
   0x6   :  { %26 = vperm.xlu0 %212, %v23_v13  }
   0xc   :  { %104 = vmatmul.mubr.f32.vlgmr.msra.gmra.mrb[0].mxu1 %v14_v14  ;;  %196 = vmatmul.mubr.msk.f32.vlgmr.msra.gmra.mrb[0].mxu0 %vm29_vm0, %v16_v15 }
  0x85   :  { %v27_v16 = vpop.permute.xlu0 %26 }
  0xdf   :  { %v105_v17 = vpop.f32.mrb[0].mxu1  ;;  %v175_v18 = vpop.f32.mrb[0].mxu0 }
  0xe0   :  { %v106_v19 = vadd.f32 %v105_v17, %v27_v16  ;;  %v107_v20 = vpop.f32.mrb[1].mxu1  ;;  %v197_v21 = vpop.f32.mrb[1].mxu0 }
  0xe2   :  { %v176_v22 = vadd.f32 %v175_v18, %v106_v19 }
  0xe4   :  { %180 = vst.msk [vmem:[%s276_s3] sm:$0xff] %vm179_vm3, %v176_v22 }

</bundles_post_ra>
